<compile_context>
chip_gen: v6e
topology: v6e:2x2x1
jax: 0.10.0
libtpu: 0.0.40
codegen_flags: <defaults>
</compile_context>

<pallas_src>
import functools

import jax
import jax.numpy as jnp
from jax.experimental import pallas as pl
from jax.experimental.pallas import tpu as pltpu


def _round_up(x: int, m: int) -> int:
    return (x + m - 1) // m * m


# VMEM budget used to cap the batch tile (double-buffered streams + resident W)
# and the explicit scoped-VMEM limit.  48 MiB < v7x's 64 MiB physical VMEM.
_VMEM_BUDGET = 40 * 1024 * 1024
_VMEM_LIMIT = 48 * 1024 * 1024


# -----------------------------------------------------------------------------
# Fused kernel:
#   logits tile = bf16(x_tile) @ W_bf16 + b          (MXU, f32 accumulate)
#   acc        += (logits - target)^2  (row-masked)   (VPU)
#   finalize   -> partial loss sum per core split     (one XLU reduce)
# -----------------------------------------------------------------------------
def fused_linear_mse_kernel(x_ref, w_ref, b_ref, tgt_ref,      # inputs
                            logits_ref, loss_ref,              # outputs
                            acc_ref,                           # VMEM scratch
                            *, true_rows, tile_rows, tiles_per_split):
    c = pl.program_id(0)          # core-split index ("parallel")
    i = pl.program_id(1)          # batch-tile index within split ("arbitrary")

    @pl.when(i == 0)
    def _init():
        acc_ref[...] = jnp.zeros_like(acc_ref)

    # Cast x to bf16 in-kernel (no padded HBM copy); MXU with f32 accumulation.
    x_bf16 = x_ref[...].astype(jnp.bfloat16)
    logits = jnp.dot(x_bf16, w_ref[...],
                     preferred_element_type=jnp.float32) + b_ref[...]
    logits_ref[...] = logits.astype(logits_ref.dtype)

    # Squared error, elementwise-accumulated in f32 VMEM (pure VPU per step).
    diff = logits - tgt_ref[...]
    sq = diff * diff
    if true_rows % tile_rows != 0:
        # Ragged last tile: mask rows past the true batch (their x block rows
        # are undefined padding and would pollute the loss).
        row0 = (c * tiles_per_split + i) * tile_rows
        row = row0 + jax.lax.broadcasted_iota(jnp.int32, sq.shape, 0)
        sq = jnp.where(row < true_rows, sq, jnp.float32(0.0))
    acc_ref[...] += sq

    @pl.when(i == pl.num_programs(1) - 1)
    def _finalize():
        # One cross-lane reduce per split, stored as this split's partial sum.
        loss_ref[0, 0] = jnp.sum(acc_ref[...])


# -----------------------------------------------------------------------------
# Wrapper: no input padding, batch tiled up to 512 rows, optional 2-way core
# split of the tile loop, partial losses combined (fused under jit).
# -----------------------------------------------------------------------------
def _fused_linear_mse(x, w_bf16, b_f32, target, *, tm=None):
    B, D_in = x.shape
    D_out = w_bf16.shape[1]

    if tm is None:
        tm = min(512, _round_up(B, 8))

        def footprint(t):
            return (2 * t * D_in * 4        # x tiles (f32, double-buffered)
                    + 2 * t * D_out * 4     # target tiles
                    + 2 * t * D_out * 4     # logits tiles
                    + 2 * D_in * D_out * 2  # W (bf16, assume double-buffered)
                    + 2 * D_out * 4         # b
                    + t * D_out * 4)        # VMEM accumulator scratch

        while tm > 8 and footprint(tm) > _VMEM_BUDGET:
            tm //= 2
        tm = max(8, _round_up(tm, 8))
    else:
        tm = max(8, _round_up(tm, 8))

    tiles_total = pl.cdiv(B, tm)
    # Split the tile loop across TensorCores when it divides evenly (2x on
    # v7x megacore; a size-1 leading axis otherwise, harmless on v5e/v6e).
    n_splits = 2 if (tiles_total >= 2 and tiles_total % 2 == 0) else 1
    tiles_per_split = tiles_total // n_splits

    kernel = functools.partial(
        fused_linear_mse_kernel,
        true_rows=B, tile_rows=tm, tiles_per_split=tiles_per_split)

    def row_map(c, i):
        return (c * tiles_per_split + i, 0)

    logits, loss_partials = pl.pallas_call(
        kernel,
        grid=(n_splits, tiles_per_split),
        in_specs=[
            pl.BlockSpec((tm, D_in), row_map),                   # x tile (f32)
            pl.BlockSpec((D_in, D_out), lambda c, i: (0, 0)),    # W (resident)
            pl.BlockSpec((1, D_out), lambda c, i: (0, 0)),       # b (resident)
            pl.BlockSpec((tm, D_out), row_map),                  # target tile
        ],
        out_specs=(
            pl.BlockSpec((tm, D_out), row_map),                  # logits tile
            pl.BlockSpec((1, 1), lambda c, i: (c, 0),
                         memory_space=pltpu.SMEM),               # partial loss
        ),
        out_shape=(
            jax.ShapeDtypeStruct((B, D_out), jnp.float32),
            jax.ShapeDtypeStruct((n_splits, 1), jnp.float32),
        ),
        scratch_shapes=[pltpu.VMEM((tm, D_out), jnp.float32)],
        compiler_params=pltpu.CompilerParams(
            # batch-tile axis carries the loss reduction -> sequential;
            # leading split axis is safe to shard across cores.
            dimension_semantics=("parallel", "arbitrary"),
            vmem_limit_bytes=_VMEM_LIMIT),
    )(x, w_bf16, b_f32, target)

    loss = jnp.sum(loss_partials) / jnp.float32(B * D_out)
    return logits, loss


# jit the whole wrapper: pallas_call + partial-sum/divide fuse into one
# executable, removing per-call dispatch overhead and epilogue copies.
fused_linear_mse = jax.jit(_fused_linear_mse, static_argnames=("tm",))


class SimpleLinearModel:
    """Concrete JAX/Pallas analogue of a `BaseModel` subclass (linear + MSE)."""

    def __init__(self, d_in: int, d_out: int, key):
        k_w, k_b = jax.random.split(key)
        self.w = (jax.random.normal(k_w, (d_in, d_out), jnp.float32)
                  / jnp.sqrt(jnp.float32(d_in)))
        self.b = 0.01 * jax.random.normal(k_b, (1, d_out), jnp.float32)
        # Hoisted: bf16 MXU copy of W built exactly once (not per forward()).
        self.w_bf16 = self.w.astype(jnp.bfloat16)

    def forward(self, batch, tm=None):
        # Fused: one pallas_call produces both logits and the MSE loss.
        logits, loss = fused_linear_mse(
            batch["x"], self.w_bf16, self.b, batch["target"], tm=tm)
        return {"logits": logits, "loss": loss}

    def compute_loss(self, outputs, batch):
        # Loss was computed fused with the forward pass (no HBM round trip).
        return outputs["loss"]


# -----------------------------------------------------------------------------
# Reference check + entry point
# -----------------------------------------------------------------------------
def _reference(x, w, b, target):
    # Same numerics as the kernel: bf16 MXU inputs, f32 accumulate/bias/MSE.
    logits = jnp.dot(x.astype(jnp.bfloat16), w.astype(jnp.bfloat16),
                     preferred_element_type=jnp.float32) + b
    loss = jnp.mean((logits - target) ** 2)
    return logits, loss


if __name__ == "__main__":
    key = jax.random.PRNGKey(0)
    k_x, k_t, k_p, k_x2, k_t2, k_x3, k_t3 = jax.random.split(key, 7)

    D_in, D_out = 32, 16
    model = SimpleLinearModel(D_in, D_out, k_p)

    # --- main small-shape check (single tile) --------------------------------
    B = 8
    x = jax.random.normal(k_x, (B, D_in), jnp.float32)
    target = jax.random.normal(k_t, (B, D_out), jnp.float32)
    batch = {"x": x, "target": target}

    outputs = model.forward(batch)
    loss = model.compute_loss(outputs, batch)
    logits = jax.block_until_ready(outputs["logits"])
    loss = jax.block_until_ready(loss)

    ref_logits, ref_loss = _reference(x, model.w, model.b, target)
    assert logits.shape == (B, D_out)
    assert jnp.allclose(logits, ref_logits, atol=1e-4, rtol=1e-4), "logits"
    assert jnp.allclose(loss, ref_loss, atol=1e-4, rtol=1e-4), "loss"

    # --- multi-tile + 2-way core split path (B=32, tm=8 -> grid (2, 2)) ------
    B2 = 32
    x2 = jax.random.normal(k_x2, (B2, D_in), jnp.float32)
    t2 = jax.random.normal(k_t2, (B2, D_out), jnp.float32)
    o2 = model.forward({"x": x2, "target": t2}, tm=8)
    r_logits2, r_loss2 = _reference(x2, model.w, model.b, t2)
    assert jnp.allclose(jax.block_until_ready(o2["logits"]), r_logits2,
                        atol=1e-4, rtol=1e-4), "split logits"
    assert jnp.allclose(o2["loss"], r_loss2, atol=1e-4, rtol=1e-4), "split loss"

    # --- ragged last tile path (B=36, tm=8 -> 5 tiles, row mask active) ------
    B3 = 36
    x3 = jax.random.normal(k_x3, (B3, D_in), jnp.float32)
    t3 = jax.random.normal(k_t3, (B3, D_out), jnp.float32)
    o3 = model.forward({"x": x3, "target": t3}, tm=8)
    r_logits3, r_loss3 = _reference(x3, model.w, model.b, t3)
    assert jnp.allclose(jax.block_until_ready(o3["logits"]), r_logits3,
                        atol=1e-4, rtol=1e-4), "ragged logits"
    assert jnp.allclose(o3["loss"], r_loss3, atol=1e-4, rtol=1e-4), "ragged loss"

    print("KERNEL_OK")
</pallas_src>

<mosaic_0001>
module attributes {stable_mosaic.version = 11 : i64} {
  func.func @fused_linear_mse_kernel(%arg0: i32, %arg1: i32, %arg2: memref<8x32xf32, #tpu.memory_space<vmem>>, %arg3: memref<32x16xbf16, #tpu.memory_space<vmem>>, %arg4: memref<1x16xf32, #tpu.memory_space<vmem>>, %arg5: memref<8x16xf32, #tpu.memory_space<vmem>>, %arg6: memref<8x16xf32, #tpu.memory_space<vmem>>, %arg7: memref<1x1xf32, #tpu.memory_space<smem>>, %arg8: memref<8x16xf32, #tpu.memory_space<vmem>>) attributes {dimension_semantics = [#tpu.dimension_semantics<parallel>, #tpu.dimension_semantics<arbitrary>], iteration_bounds = array<i64: 1, 1>, scalar_prefetch = 0 : i64, scratch_operands = 1 : i64, tpu.core_type = #tpu.core_type<tc>, window_params = [{transform_indices = @transform_0, window_bounds = array<i64: 8, 32>}, {pipeline_mode = #tpu.pipeline_mode<synchronous>, transform_indices = @transform_1, window_bounds = array<i64: 32, 16>}, {pipeline_mode = #tpu.pipeline_mode<synchronous>, transform_indices = @transform_2, window_bounds = array<i64: 1, 16>}, {transform_indices = @transform_3, window_bounds = array<i64: 8, 16>}, {transform_indices = @transform_4, window_bounds = array<i64: 8, 16>}, {transform_indices = @transform_5, window_bounds = array<i64: 1, 1>}]} {
    %c0_i32 = arith.constant 0 : i32
    %0 = arith.cmpi eq, %arg1, %c0_i32 : i32
    %1 = arith.extui %0 : i1 to i32
    %c0_i32_0 = arith.constant 0 : i32
    %2 = arith.cmpi ne, %1, %c0_i32_0 : i32
    scf.if %2 {
      %cst_16 = arith.constant 0.000000e+00 : f32
      %20 = vector.broadcast %cst_16 : f32 to vector<8x16xf32>
      %c0_17 = arith.constant 0 : index
      %c0_18 = arith.constant 0 : index
      %21 = vector.load %arg8[%c0_17, %c0_18] : memref<8x16xf32, #tpu.memory_space<vmem>>, vector<8x16xf32>
      tpu.vector_store %arg8[%c0_17, %c0_18], %20 {strides = array<i32>} : memref<8x16xf32, #tpu.memory_space<vmem>>, vector<8x16xf32>,
    } else {
    }
    %c0 = arith.constant 0 : index
    %c0_1 = arith.constant 0 : index
    %3 = vector.load %arg2[%c0, %c0_1] : memref<8x32xf32, #tpu.memory_space<vmem>>, vector<8x32xf32>
    %4 = arith.truncf %3 : vector<8x32xf32> to vector<8x32xbf16>
    %c0_2 = arith.constant 0 : index
    %c0_3 = arith.constant 0 : index
    %5 = vector.load %arg3[%c0_2, %c0_3] : memref<32x16xbf16, #tpu.memory_space<vmem>>, vector<32x16xbf16>
    %cst = arith.constant dense<0.000000e+00> : vector<8x16xf32>
    %6 = tpu.matmul %4, %5, %cst {dimension_numbers = #tpu.dot_dimension_numbers<[1], [0], [0], [1], [0, 0, 1, 1], [], []>} : vector<8x32xbf16>, vector<32x16xbf16>, vector<8x16xf32> -> vector<8x16xf32>
    %c0_4 = arith.constant 0 : index
    %c0_5 = arith.constant 0 : index
    %7 = vector.load %arg4[%c0_4, %c0_5] : memref<1x16xf32, #tpu.memory_space<vmem>>, vector<1x16xf32>
    %8 = vector.broadcast %7 : vector<1x16xf32> to vector<8x16xf32>
    %9 = arith.addf %6, %8 : vector<8x16xf32>
    %c0_6 = arith.constant 0 : index
    %c0_7 = arith.constant 0 : index
    %10 = vector.load %arg6[%c0_6, %c0_7] : memref<8x16xf32, #tpu.memory_space<vmem>>, vector<8x16xf32>
    tpu.vector_store %arg6[%c0_6, %c0_7], %9 {strides = array<i32>} : memref<8x16xf32, #tpu.memory_space<vmem>>, vector<8x16xf32>,
    %c0_8 = arith.constant 0 : index
    %c0_9 = arith.constant 0 : index
    %11 = vector.load %arg5[%c0_8, %c0_9] : memref<8x16xf32, #tpu.memory_space<vmem>>, vector<8x16xf32>
    %12 = arith.subf %9, %11 : vector<8x16xf32>
    %13 = arith.mulf %12, %12 : vector<8x16xf32>
    %c0_10 = arith.constant 0 : index
    %c0_11 = arith.constant 0 : index
    %14 = vector.load %arg8[%c0_10, %c0_11] : memref<8x16xf32, #tpu.memory_space<vmem>>, vector<8x16xf32>
    %15 = arith.addf %14, %13 : vector<8x16xf32>
    %c0_12 = arith.constant 0 : index
    %c0_13 = arith.constant 0 : index
    %16 = vector.load %arg8[%c0_12, %c0_13] : memref<8x16xf32, #tpu.memory_space<vmem>>, vector<8x16xf32>
    tpu.vector_store %arg8[%c0_12, %c0_13], %15 {strides = array<i32>} : memref<8x16xf32, #tpu.memory_space<vmem>>, vector<8x16xf32>,
    %c0_i32_14 = arith.constant 0 : i32
    %17 = arith.cmpi eq, %arg1, %c0_i32_14 : i32
    %18 = arith.extui %17 : i1 to i32
    %c0_i32_15 = arith.constant 0 : i32
    %19 = arith.cmpi ne, %18, %c0_i32_15 : i32
    scf.if %19 {
      %c0_16 = arith.constant 0 : index
      %c0_17 = arith.constant 0 : index
      %20 = vector.load %arg8[%c0_16, %c0_17] : memref<8x16xf32, #tpu.memory_space<vmem>>, vector<8x16xf32>
      %21 = vector.shape_cast %20 : vector<8x16xf32> to vector<1x8x16xf32>
      %cst_18 = arith.constant dense<0.000000e+00> : vector<1xf32>
      %22 = vector.multi_reduction <add>, %21, %cst_18 [1, 2] : vector<1x8x16xf32> to vector<1xf32>
      %23 = vector.shape_cast %22 : vector<1xf32> to vector<1x1x1xf32>
      %24 = vector.extract %23[0, 0, 0] : f32 from vector<1x1x1xf32>
      %c0_19 = arith.constant 0 : index
      %c0_20 = arith.constant 0 : index
      %25 = memref.load %arg7[%c0_19, %c0_20] : memref<1x1xf32, #tpu.memory_space<smem>>
      memref.store %24, %arg7[%c0_19, %c0_20] : memref<1x1xf32, #tpu.memory_space<smem>>
    } else {
    }
    return
  }
  func.func @transform_0(%arg0: i32, %arg1: i32) -> (i32, i32) {
    %c1_i32 = arith.constant 1 : i32
    %0 = arith.muli %arg0, %c1_i32 : i32
    %1 = arith.addi %0, %arg1 : i32
    %c0_i32 = arith.constant 0 : i32
    %c0_i32_0 = arith.constant 0 : i32
    return %1, %c0_i32 : i32, i32
  }
  func.func @transform_1(%arg0: i32, %arg1: i32) -> (i32, i32) {
    %c0_i32 = arith.constant 0 : i32
    %c0_i32_0 = arith.constant 0 : i32
    %c0_i32_1 = arith.constant 0 : i32
    return %c0_i32, %c0_i32_0 : i32, i32
  }
  func.func @transform_2(%arg0: i32, %arg1: i32) -> (i32, i32) {
    %c0_i32 = arith.constant 0 : i32
    %c0_i32_0 = arith.constant 0 : i32
    %c0_i32_1 = arith.constant 0 : i32
    return %c0_i32, %c0_i32_0 : i32, i32
  }
  func.func @transform_3(%arg0: i32, %arg1: i32) -> (i32, i32) {
    %c1_i32 = arith.constant 1 : i32
    %0 = arith.muli %arg0, %c1_i32 : i32
    %1 = arith.addi %0, %arg1 : i32
    %c0_i32 = arith.constant 0 : i32
    %c0_i32_0 = arith.constant 0 : i32
    return %1, %c0_i32 : i32, i32
  }
  func.func @transform_4(%arg0: i32, %arg1: i32) -> (i32, i32) {
    %c1_i32 = arith.constant 1 : i32
    %0 = arith.muli %arg0, %c1_i32 : i32
    %1 = arith.addi %0, %arg1 : i32
    %c0_i32 = arith.constant 0 : i32
    %c0_i32_0 = arith.constant 0 : i32
    return %1, %c0_i32 : i32, i32
  }
  func.func @transform_5(%arg0: i32, %arg1: i32) -> (i32, i32) {
    %c0_i32 = arith.constant 0 : i32
    %c0_i32_0 = arith.constant 0 : i32
    return %arg0, %c0_i32 : i32, i32
  }
}

</mosaic_0001>

<bundles_post_ra>
// kernel: _fused_linear_mse.1
= control target key start
LH: loop header
LB: loop body
LE: loop exit
PB: predicated region body
PF: predicated region fallthrough
CT: control target
= control target key end

     0   :  { %11 = vsyncpa [#allocation4], 0  ;;  %v253_v1 = vmov 0.0   ;;  %vm254_vm0 = vmmov 0   ;;  %s312_s0 = inlined_call_operand.vmem [shape: f32[8,32], index: 0, kind: input, shape index: {}]   ;;  %s313_s1 = inlined_call_operand.vmem [shape: bf16[32,16], index: 1, kind: input, shape index: {}]   ;;  %s314_s2 = inlined_call_operand.vmem [shape: f32[1,16], index: 2, kind: input, shape index: {}]   ;;  %s315_s3 = inlined_call_operand.vmem [shape: f32[8,16], index: 3, kind: input, shape index: {}]   ;;  %s316_s4 = inlined_call_operand.hbm [shape: f32[8,16], index: 4, kind: output, shape index: {0}]   ;;  %s317_s5 = inlined_call_operand.hbm [shape: f32[1,1], index: 5, kind: output, shape index: {1}]  }
   0x1   :  { %v219_v0 = vld [vmem:[%s313_s1 + $0x8] sm:$0xff]   ;;  %205 = vmatprep.subr.bf16.mxu0 %v253_v1  ;;  %v220_v2 = vld [vmem:[%s313_s1] sm:$0xff]   ;;  %209 = vmatprep.mubr.msk.bf16.mxu0 %vm254_vm0, %v253_v1 }
   0x2   :  { %206 = vmatpush3.bf16.msra.mxu0 %v219_v0  ;;  %v63_v3 = vld [vmem:[%s312_s0] sm:$0xff] }
   0x3   :  { %12 = vsyncpa [#allocation5], 0  ;;  %207 = vmatprep.subr.bf16.mxu0 %v253_v1  ;;  %v64_v4 = vpack.c.bf16 %v63_v3, %v63_v3  ;;  %vm88_vm1 = vcmask 261120   ;;  %vm61_vm2 = vcmask 130048   ;;  %v198_v5 = vld [vmem:[%s314_s2] ss:$0 sm:$0xff] }
   0x4   :  { %62 = vst.msk [vmem:[#allocation2] sm:$0xff] %vm61_vm2, %v253_v1  ;;  %v134_v7 = vld [vmem:[%s315_s3] sm:$0xff]  ;;  %s255_s0 = smov [#allocation3]  }
   0x5   :  { %s165_s2 = sshll.u32 %s255_s0, 4  ;;  %s166_s2 = int_to_ptr.vmem [resolvable:$true] %s165_s2 }
   0x6   :  { %208 = vmatpush3.bf16.msra.mxu0 %v220_v2  ;;  %s221_s3 = scalar_lea.vmem %s166_s2, 128  ;;  %p226_p1 = scmp.lt.s32.totalorder %s166_s2, %s166_s2 }
   0x7   :  { %p222_p0 = scmp.ne.s32.totalorder %s166_s2, %s221_s3  ;;  %p227_p2 = scmp.lt.s32.totalorder %s221_s3, %s221_s3 }
   0x9   :  { %210 = vmatmul.mubr.msk.bf16.vlgmr.msra.gmra.mxu0 %vm88_vm1, %v64_v4  ;;  %p228_p3 = por %p227_p2, %p226_p1 }
   0xb   :  { %v137_v12 = vld [vmem:[#allocation2] sm:$0xff]  ;;  %p229_p4 = pnand %p228_p3, %p222_p0 }
  0xc9   :  { %v126_v6 = vpop.f32.mrf.mxu0 }
  0xca   :  { %v127_v8 = vadd.f32 %v198_v5, %v126_v6 }
  0xcb   :  { %v211_v9 = vpop.f32.mrf.mxu0 }
  0xcc   :  { %v135_v10 = vsub.f32 %v127_v8, %v134_v7  ;;  %133 = vst.msk [vmem:[#allocation3] sm:$0xff] %vm61_vm2, %v127_v8 }
  0xcd   :  { %v129_v11 = vpop.f32.mrf.mxu0 }
  0xce   :  { %v136_v13 = vmul.f32 %v135_v10, %v135_v10 }
  0xcf   :  { %v212_v14 = vpop.f32.mrf.mxu0 }
  0xd0   :  { %v138_v15 = vadd.f32 %v137_v12, %v136_v13 }
  0xd2   :  { %139 = vst.msk [vmem:[#allocation2] sm:$0xff] %vm61_vm2, %v138_v15 }
  0xd9   :  { %v143_v16 = vld [vmem:[#allocation2] sm:$0xff] }
  0xda   :  { %v144_v17 = vsel %vm61_vm2, %v143_v16, 0.0 }
  0xdb   :  { %145 = vadd.xlane.f32.xlu0 %v144_v17 }
  0xdc   :  { %232 = shalt.err (!%p229_p4)
}
  0xdd   :  { %168 = dma.vmem_to_hbm [thread:$0]  %s166_s2, 128, %s316_s4, [#allocation4]  }
  0xde   :  { %s256_s30 = smov [#allocation6]  }
 0x164   :  { %v146_v18 = vpop.xlane.xlu0 %145 }
 0x165   :  { %v147_v19 = vrot.slane %v146_v18, 4 }
 0x167   :  { %v148_v20 = vadd.f32 %v147_v19, %v146_v18 }
 0x169   :  { %v149_v21 = vrot.slane %v148_v20, 2 }
 0x16b   :  { %v150_v22 = vadd.f32 %v149_v21, %v148_v20 }
 0x16d   :  { %v151_v23 = vrot.slane %v150_v22, 1 }
 0x16f   :  { %v152_v24 = vadd.f32 %v151_v23, %v150_v22 }
 0x171   :  { %213 = vpush %v152_v24 }
 0x1a2   :  { %s214_s29 = spop %213 }
 0x1a3   :  { %155 = sst [smem:[#allocation6]] %s214_s29 }
 0x1a4   :  { %176 = dma.smem_to_hbm %s256_s30, 16, %s317_s5, [#allocation5]  }
 0x1a5   :  { %249 = dma.done.wait [#allocation4], 128  }
 0x1a6   :  { %250 = vsyncadd [#allocation4], 4294967168 }
 0x1a7   :  { %251 = dma.done.wait [#allocation5], 16  }
 0x1a8   :  { %252 = vsyncadd [#allocation5], 4294967280 }
 0x1a9   :  { %183 = sfence }
 0x1aa   :  { %184 = vsyncpa [#allocation4], 1 }
 0x1ab   :  { %185 = vsyncpa [#allocation5], 1 }

</bundles_post_ra>
